<compile_context>
chip_gen: v6e
topology: v6e:2x2x1
jax: 0.10.0
libtpu: 0.0.40
codegen_flags: <defaults>
</compile_context>

<pallas_src>
import functools

import jax
import jax.numpy as jnp
from jax.experimental import pallas as pl
from jax.experimental.pallas import tpu as pltpu

LN_EPS = 1e-5                        # nn.LayerNorm default
_VMEM_BUDGET = 40 * 1024 * 1024      # fits v7x's 64 MiB physical VMEM with headroom


def _round_up(x, m):
    return (x + m - 1) // m * m


def _select_tiles(N, Dp, x_bytes, out_bytes, mxu_bytes, tm_max):
    """Pick (TM row tile, TN weight-output-column tile) to fit _VMEM_BUDGET."""
    # Weight: keep the full (Dp, Dp) block resident when it fits half the budget even
    # double-buffered; otherwise column-tile it (needed for D >= ~4096 on v7x).
    if 2 * Dp * Dp * mxu_bytes <= _VMEM_BUDGET // 2:
        TN = Dp
    else:
        TN = max(128, ((_VMEM_BUDGET // 2) // (2 * Dp * mxu_bytes)) // 128 * 128)

    # Rows: x/out double-buffered + y scratch + ~3 (TM, Dp) f32 temporaries.
    w_bytes = 2 * Dp * TN * mxu_bytes
    per_row = Dp * (2 * x_bytes + mxu_bytes + 3 * 4) + TN * (2 * out_bytes + 4)
    TM = int(min(tm_max, max(8, (_VMEM_BUDGET - w_bytes) // per_row)))
    # Keep >= 2 row blocks so both v7x TensorCores get work on the "parallel" axis.
    TM = min(TM, _round_up(pl.cdiv(N, 2), 8))
    TM = max(8, (TM // 8) * 8)
    if N < 8:
        TM = N   # full-extent first dim is allowed when smaller than a sublane tile
    return TM, TN


def _prenorm_linear_kernel(x_ref, gamma_ref, beta_ref, w_ref, bias_ref,
                           o_ref, y_ref, *, true_d, eps):
    # grid = (row blocks i [parallel, outer], weight-column blocks j [arbitrary, inner])
    # x_ref: (TM, Dp) rows (feature dim zero-padded to Dp); gamma/beta: (1, Dp) f32
    # w_ref: (Dp, TN) MXU dtype; bias_ref: (1, TN) f32; o_ref: (TM, TN)
    # y_ref: (TM, Dp) VMEM scratch with the LayerNorm output (computed once per row tile).

    @pl.when(pl.program_id(1) == 0)
    def _compute_layernorm():
        xf = x_ref[...].astype(jnp.float32)
        inv_d = 1.0 / true_d
        mean = jnp.sum(xf, axis=-1, keepdims=True) * inv_d
        xc = xf - mean
        if x_ref.shape[-1] != true_d:
            # Zero padded lanes so they do not pollute the variance.
            lane = jax.lax.broadcasted_iota(jnp.int32, xc.shape, 1)
            xc = jnp.where(lane < true_d, xc, 0.0)
        var = jnp.sum(xc * xc, axis=-1, keepdims=True) * inv_d
        # gamma/beta padded lanes are zero -> padded lanes of y are exactly zero,
        # so they contribute nothing to the matmul below.
        y_ref[...] = (xc * jax.lax.rsqrt(var + eps)
                      * gamma_ref[...] + beta_ref[...]).astype(y_ref.dtype)

    # fn = Linear: MXU matmul in the weight dtype with f32 accumulation.
    o_ref[...] = (jnp.dot(y_ref[...], w_ref[...],
                          preferred_element_type=jnp.float32)
                  + bias_ref[...]).astype(o_ref.dtype)


def prenorm_linear(x, gamma, beta, w, bias, *,
                   mxu_dtype=jnp.bfloat16, out_dtype=None,
                   stream_dtype=None, tm_max=1024):
    """PreNorm(dim, Linear(dim, dim)) forward: LayerNorm(x) @ w + bias.

    x: (B, S, D); gamma, beta, bias: (D,); w: (D, D) laid out (in, out)
    (i.e. the transpose of torch.nn.Linear.weight).
    """
    B, S, D = x.shape
    N = B * S
    mxu_dtype = jnp.dtype(mxu_dtype)
    out_dtype = jnp.dtype(out_dtype) if out_dtype is not None else x.dtype
    bf16 = jnp.dtype(jnp.bfloat16)

    Dp = _round_up(D, 128)      # lane-dense feature dim: unmasked vst + full MXU lanes
    pad_d = Dp != D

    # Stream x in bf16 whenever that is free (pad copy needed anyway, or caller
    # already supplies bf16); otherwise keep x's dtype and avoid an extra HBM pass.
    if stream_dtype is None:
        if mxu_dtype == bf16 and (pad_d or x.dtype == bf16):
            stream_dtype = bf16
        else:
            stream_dtype = x.dtype
    else:
        stream_dtype = jnp.dtype(stream_dtype)

    x2 = x.reshape(N, D)
    if x2.dtype != stream_dtype:
        x2 = x2.astype(stream_dtype)            # cast BEFORE padding: staging copy is narrow
    gamma2 = gamma.reshape(1, D).astype(jnp.float32)
    beta2 = beta.reshape(1, D).astype(jnp.float32)
    bias2 = bias.reshape(1, D).astype(jnp.float32)
    # TODO(synk): pre-cast/pre-pad the weight once at module init and reuse across calls.
    w2 = w.astype(mxu_dtype)                    # cast BEFORE padding
    if pad_d:
        pd = Dp - D
        x2 = jnp.pad(x2, ((0, 0), (0, pd)))
        gamma2 = jnp.pad(gamma2, ((0, 0), (0, pd)))
        beta2 = jnp.pad(beta2, ((0, 0), (0, pd)))
        bias2 = jnp.pad(bias2, ((0, 0), (0, pd)))
        w2 = jnp.pad(w2, ((0, pd), (0, pd)))

    x_bytes = jnp.dtype(stream_dtype).itemsize
    o_bytes = out_dtype.itemsize
    TM, TN = _select_tiles(N, Dp, x_bytes, o_bytes, mxu_dtype.itemsize, tm_max)
    Gm, Gn = pl.cdiv(N, TM), pl.cdiv(Dp, TN)

    # Explicit scoped-VMEM limit sized from the actual working set (defaults are
    # 16 MiB on v5e / 32 MiB on v6e,v7x and would reject large tiles otherwise).
    vmem_need = (2 * TM * Dp * x_bytes                # x, double-buffered
                 + 2 * TM * TN * o_bytes              # out, double-buffered
                 + 2 * Dp * TN * mxu_dtype.itemsize   # weight (worst case 2 buffers)
                 + 4 * Dp * 4 + 2 * TN * 4            # gamma / beta / bias
                 + TM * Dp * mxu_dtype.itemsize       # y scratch
                 + 3 * TM * Dp * 4 + TM * TN * 4)     # in-kernel f32 temporaries
    vmem_limit = int(max(4 << 20, min(64 << 20, int(vmem_need * 1.3) + (1 << 20))))

    cost = pl.CostEstimate(
        flops=int(2 * N * Dp * Dp + 10 * N * Dp),
        transcendentals=int(N),
        bytes_accessed=int(N * Dp * (x_bytes + o_bytes)
                           + (Gm if Gn > 1 else 1) * Dp * Dp * mxu_dtype.itemsize
                           + 3 * Dp * 4),
    )

    kernel = functools.partial(_prenorm_linear_kernel, true_d=D, eps=LN_EPS)

    def _specs(single_buffer_resident):
        def resident(shape, index_map):
            if single_buffer_resident:
                return pl.BlockSpec(shape, index_map, pipeline_mode=pl.Buffered(1))
            return pl.BlockSpec(shape, index_map)
        in_specs = [
            pl.BlockSpec((TM, Dp), lambda i, j: (i, 0)),   # x rows (pipelined over i)
            resident((1, Dp), lambda i, j: (0, 0)),        # gamma (DMA'd once)
            resident((1, Dp), lambda i, j: (0, 0)),        # beta
        ]
        if Gn == 1:   # weight/bias block index constant -> resident, single-buffered
            in_specs += [resident((Dp, TN), lambda i, j: (0, j)),
                         resident((1, TN), lambda i, j: (0, j))]
        else:         # column-tiled weight: keep the default pipeline buffering
            in_specs += [pl.BlockSpec((Dp, TN), lambda i, j: (0, j)),
                         pl.BlockSpec((1, TN), lambda i, j: (0, j))]
        out_specs = pl.BlockSpec((TM, TN), lambda i, j: (i, j))
        return in_specs, out_specs

    def _run(single_buffer_resident):
        in_specs, out_specs = _specs(single_buffer_resident)
        return pl.pallas_call(
            kernel,
            out_shape=jax.ShapeDtypeStruct((N, Dp), out_dtype),
            grid_spec=pltpu.PrefetchScalarGridSpec(
                num_scalar_prefetch=0,
                grid=(Gm, Gn),                 # j (weight columns) is the inner axis
                in_specs=in_specs,
                out_specs=out_specs,
                scratch_shapes=[pltpu.VMEM((TM, Dp), mxu_dtype)],   # LayerNorm output y
            ),
            compiler_params=pltpu.CompilerParams(
                dimension_semantics=("parallel", "arbitrary"),
                vmem_limit_bytes=vmem_limit),
            cost_estimate=cost,
        )(x2, gamma2, beta2, w2, bias2)

    try:
        out2 = _run(single_buffer_resident=True)
    except Exception:
        # pipeline_mode=pl.Buffered(1) unsupported on this jax version/backend:
        # fall back to default double-buffered resident operands (correctness identical).
        out2 = _run(single_buffer_resident=False)

    if pad_d:
        out2 = out2[:, :D]
    return out2.reshape(B, S, D)


def reference(x, gamma, beta, w, bias):
    xf = x.astype(jnp.float32)
    mean = jnp.mean(xf, axis=-1, keepdims=True)
    var = jnp.mean((xf - mean) ** 2, axis=-1, keepdims=True)
    y = (xf - mean) * jax.lax.rsqrt(var + LN_EPS) * gamma + beta
    return (y @ w + bias).astype(x.dtype)


if __name__ == "__main__":
    def make_inputs(B, S, D, key):
        kx, kg, kb, kw, kbias = jax.random.split(key, 5)
        x = jax.random.normal(kx, (B, S, D), dtype=jnp.float32)
        gamma = 1.0 + 0.1 * jax.random.normal(kg, (D,), dtype=jnp.float32)
        beta = 0.1 * jax.random.normal(kb, (D,), dtype=jnp.float32)
        w = 0.02 * jax.random.normal(kw, (D, D), dtype=jnp.float32)
        bias = 0.01 * jax.random.normal(kbias, (D,), dtype=jnp.float32)
        return x, gamma, beta, w, bias

    # Case 1: D not a multiple of 128 -> feature pad + bf16 streaming path.
    x, gamma, beta, w, bias = make_inputs(2, 8, 32, jax.random.PRNGKey(0))
    ref = reference(x, gamma, beta, w, bias)

    out = jax.block_until_ready(prenorm_linear(x, gamma, beta, w, bias))
    assert out.shape == x.shape and out.dtype == x.dtype
    err = float(jnp.max(jnp.abs(out - ref)))
    assert jnp.allclose(out, ref, atol=2e-2, rtol=2e-2), f"bf16 path max err {err}"

    # Full-precision path: tight numerical check of the kernel math.
    out_f32 = jax.block_until_ready(
        prenorm_linear(x, gamma, beta, w, bias, mxu_dtype=jnp.float32))
    err = float(jnp.max(jnp.abs(out_f32 - ref)))
    assert jnp.allclose(out_f32, ref, atol=1e-4, rtol=1e-4), f"f32 path max err {err}"

    # Case 2: lane-aligned D (no pad / no slice copies) and a ragged row count
    # (exercises the partial last row block of the cdiv grid).
    x2i, g2i, b2i, w2i, bias2i = make_inputs(3, 5, 128, jax.random.PRNGKey(1))
    ref2 = reference(x2i, g2i, b2i, w2i, bias2i)
    out2 = jax.block_until_ready(prenorm_linear(x2i, g2i, b2i, w2i, bias2i))
    err = float(jnp.max(jnp.abs(out2 - ref2)))
    assert jnp.allclose(out2, ref2, atol=2e-2, rtol=2e-2), f"aligned path max err {err}"

    print("KERNEL_OK")
</pallas_src>

<mosaic_0001>
module attributes {stable_mosaic.version = 11 : i64} {
  func.func @_prenorm_linear_kernel(%arg0: i32, %arg1: i32, %arg2: memref<8x128xbf16, #tpu.memory_space<vmem>>, %arg3: memref<1x128xf32, #tpu.memory_space<vmem>>, %arg4: memref<1x128xf32, #tpu.memory_space<vmem>>, %arg5: memref<128x128xbf16, #tpu.memory_space<vmem>>, %arg6: memref<1x128xf32, #tpu.memory_space<vmem>>, %arg7: memref<8x128xf32, #tpu.memory_space<vmem>>, %arg8: memref<8x128xbf16, #tpu.memory_space<vmem>>) attributes {dimension_semantics = [#tpu.dimension_semantics<parallel>, #tpu.dimension_semantics<arbitrary>], iteration_bounds = array<i64: 2, 1>, scalar_prefetch = 0 : i64, scratch_operands = 1 : i64, tpu.core_type = #tpu.core_type<tc>, window_params = [{transform_indices = @transform_0, window_bounds = array<i64: 8, 128>}, {pipeline_mode = #tpu.pipeline_mode<synchronous>, transform_indices = @transform_1, window_bounds = array<i64: 1, 128>}, {pipeline_mode = #tpu.pipeline_mode<synchronous>, transform_indices = @transform_2, window_bounds = array<i64: 1, 128>}, {pipeline_mode = #tpu.pipeline_mode<synchronous>, transform_indices = @transform_3, window_bounds = array<i64: 128, 128>}, {pipeline_mode = #tpu.pipeline_mode<synchronous>, transform_indices = @transform_4, window_bounds = array<i64: 1, 128>}, {transform_indices = @transform_5, window_bounds = array<i64: 8, 128>}]} {
    %c0_i32 = arith.constant 0 : i32
    %0 = arith.cmpi eq, %arg1, %c0_i32 : i32
    %1 = arith.extui %0 : i1 to i32
    %c0_i32_0 = arith.constant 0 : i32
    %2 = arith.cmpi ne, %1, %c0_i32_0 : i32
    scf.if %2 {
      %c0_8 = arith.constant 0 : index
      %c0_9 = arith.constant 0 : index
      %10 = vector.load %arg2[%c0_8, %c0_9] : memref<8x128xbf16, #tpu.memory_space<vmem>>, vector<8x128xbf16>
      %11 = arith.extf %10 : vector<8x128xbf16> to vector<8x128xf32>
      %cst_10 = arith.constant dense<0.000000e+00> : vector<8xf32>
      %12 = vector.multi_reduction <add>, %11, %cst_10 [1] : vector<8x128xf32> to vector<8xf32>
      %13 = vector.shape_cast %12 : vector<8xf32> to vector<8x1xf32>
      %cst_11 = arith.constant 3.125000e-02 : f32
      %14 = vector.broadcast %cst_11 : f32 to vector<8x1xf32>
      %15 = arith.mulf %13, %14 : vector<8x1xf32>
      %16 = vector.broadcast %15 : vector<8x1xf32> to vector<8x128xf32>
      %17 = arith.subf %11, %16 : vector<8x128xf32>
      %18 = tpu.iota {dimensions = array<i32: 1>} : vector<8x128xi32>
      %c32_i32 = arith.constant 32 : i32
      %19 = vector.broadcast %c32_i32 : i32 to vector<8x128xi32>
      %20 = arith.cmpi slt, %18, %19 : vector<8x128xi32>
      %cst_12 = arith.constant 0.000000e+00 : f32
      %21 = vector.broadcast %cst_12 : f32 to vector<8x128xf32>
      %22 = arith.select %20, %17, %21 : vector<8x128xi1>, vector<8x128xf32>
      %23 = arith.mulf %22, %22 : vector<8x128xf32>
      %cst_13 = arith.constant dense<0.000000e+00> : vector<8xf32>
      %24 = vector.multi_reduction <add>, %23, %cst_13 [1] : vector<8x128xf32> to vector<8xf32>
      %25 = vector.shape_cast %24 : vector<8xf32> to vector<8x1xf32>
      %cst_14 = arith.constant 3.125000e-02 : f32
      %26 = vector.broadcast %cst_14 : f32 to vector<8x1xf32>
      %27 = arith.mulf %25, %26 : vector<8x1xf32>
      %cst_15 = arith.constant 9.99999974E-6 : f32
      %28 = vector.broadcast %cst_15 : f32 to vector<8x1xf32>
      %29 = arith.addf %27, %28 : vector<8x1xf32>
      %30 = math.rsqrt %29 : vector<8x1xf32>
      %31 = vector.broadcast %30 : vector<8x1xf32> to vector<8x128xf32>
      %32 = arith.mulf %22, %31 : vector<8x128xf32>
      %c0_16 = arith.constant 0 : index
      %c0_17 = arith.constant 0 : index
      %33 = vector.load %arg3[%c0_16, %c0_17] : memref<1x128xf32, #tpu.memory_space<vmem>>, vector<1x128xf32>
      %34 = vector.broadcast %33 : vector<1x128xf32> to vector<8x128xf32>
      %35 = arith.mulf %32, %34 : vector<8x128xf32>
      %c0_18 = arith.constant 0 : index
      %c0_19 = arith.constant 0 : index
      %36 = vector.load %arg4[%c0_18, %c0_19] : memref<1x128xf32, #tpu.memory_space<vmem>>, vector<1x128xf32>
      %37 = vector.broadcast %36 : vector<1x128xf32> to vector<8x128xf32>
      %38 = arith.addf %35, %37 : vector<8x128xf32>
      %39 = arith.truncf %38 : vector<8x128xf32> to vector<8x128xbf16>
      %c0_20 = arith.constant 0 : index
      %c0_21 = arith.constant 0 : index
      %40 = vector.load %arg8[%c0_20, %c0_21] : memref<8x128xbf16, #tpu.memory_space<vmem>>, vector<8x128xbf16>
      tpu.vector_store %arg8[%c0_20, %c0_21], %39 {strides = array<i32>} : memref<8x128xbf16, #tpu.memory_space<vmem>>, vector<8x128xbf16>,
    } else {
    }
    %c0 = arith.constant 0 : index
    %c0_1 = arith.constant 0 : index
    %3 = vector.load %arg8[%c0, %c0_1] : memref<8x128xbf16, #tpu.memory_space<vmem>>, vector<8x128xbf16>
    %c0_2 = arith.constant 0 : index
    %c0_3 = arith.constant 0 : index
    %4 = vector.load %arg5[%c0_2, %c0_3] : memref<128x128xbf16, #tpu.memory_space<vmem>>, vector<128x128xbf16>
    %cst = arith.constant dense<0.000000e+00> : vector<8x128xf32>
    %5 = tpu.matmul %3, %4, %cst {dimension_numbers = #tpu.dot_dimension_numbers<[1], [0], [0], [1], [0, 0, 1, 1], [], []>} : vector<8x128xbf16>, vector<128x128xbf16>, vector<8x128xf32> -> vector<8x128xf32>
    %c0_4 = arith.constant 0 : index
    %c0_5 = arith.constant 0 : index
    %6 = vector.load %arg6[%c0_4, %c0_5] : memref<1x128xf32, #tpu.memory_space<vmem>>, vector<1x128xf32>
    %7 = vector.broadcast %6 : vector<1x128xf32> to vector<8x128xf32>
    %8 = arith.addf %5, %7 : vector<8x128xf32>
    %c0_6 = arith.constant 0 : index
    %c0_7 = arith.constant 0 : index
    %9 = vector.load %arg7[%c0_6, %c0_7] : memref<8x128xf32, #tpu.memory_space<vmem>>, vector<8x128xf32>
    tpu.vector_store %arg7[%c0_6, %c0_7], %8 {strides = array<i32>} : memref<8x128xf32, #tpu.memory_space<vmem>>, vector<8x128xf32>,
    return
  }
  func.func @transform_0(%arg0: i32, %arg1: i32) -> (i32, i32) {
    %c0_i32 = arith.constant 0 : i32
    %c0_i32_0 = arith.constant 0 : i32
    return %arg0, %c0_i32 : i32, i32
  }
  func.func @transform_1(%arg0: i32, %arg1: i32) -> (i32, i32) {
    %c0_i32 = arith.constant 0 : i32
    %c0_i32_0 = arith.constant 0 : i32
    %c0_i32_1 = arith.constant 0 : i32
    return %c0_i32, %c0_i32_0 : i32, i32
  }
  func.func @transform_2(%arg0: i32, %arg1: i32) -> (i32, i32) {
    %c0_i32 = arith.constant 0 : i32
    %c0_i32_0 = arith.constant 0 : i32
    %c0_i32_1 = arith.constant 0 : i32
    return %c0_i32, %c0_i32_0 : i32, i32
  }
  func.func @transform_3(%arg0: i32, %arg1: i32) -> (i32, i32) {
    %c0_i32 = arith.constant 0 : i32
    %c0_i32_0 = arith.constant 0 : i32
    return %c0_i32, %arg1 : i32, i32
  }
  func.func @transform_4(%arg0: i32, %arg1: i32) -> (i32, i32) {
    %c0_i32 = arith.constant 0 : i32
    %c0_i32_0 = arith.constant 0 : i32
    return %c0_i32, %arg1 : i32, i32
  }
  func.func @transform_5(%arg0: i32, %arg1: i32) -> (i32, i32) {
    %c0_i32 = arith.constant 0 : i32
    return %arg0, %arg1 : i32, i32
  }
}

module attributes {stable_mosaic.version = 11 : i64} {
  func.func @_prenorm_linear_kernel(%arg0: i32, %arg1: i32, %arg2: memref<8x128xbf16, #tpu.memory_space<vmem>>, %arg3: memref<1x128xf32, #tpu.memory_space<vmem>>, %arg4: memref<1x128xf32, #tpu.memory_space<vmem>>, %arg5: memref<128x128xbf16, #tpu.memory_space<vmem>>, %arg6: memref<1x128xf32, #tpu.memory_space<vmem>>, %arg7: memref<8x128xf32, #tpu.memory_space<vmem>>, %arg8: memref<8x128xbf16, #tpu.memory_space<vmem>>) attributes {dimension_semantics = [#tpu.dimension_semantics<parallel>, #tpu.dimension_semantics<arbitrary>], iteration_bounds = array<i64: 2, 1>, scalar_prefetch = 0 : i64, scratch_operands = 1 : i64, tpu.core_type = #tpu.core_type<tc>, window_params = [{transform_indices = @transform_0, window_bounds = array<i64: 8, 128>}, {pipeline_mode = #tpu.pipeline_mode<synchronous>, transform_indices = @transform_1, window_bounds = array<i64: 1, 128>}, {pipeline_mode = #tpu.pipeline_mode<synchronous>, transform_indices = @transform_2, window_bounds = array<i64: 1, 128>}, {transform_indices = @transform_3, window_bounds = array<i64: 128, 128>}, {transform_indices = @transform_4, window_bounds = array<i64: 1, 128>}, {transform_indices = @transform_5, window_bounds = array<i64: 8, 128>}]} {
    %c0_i32 = arith.constant 0 : i32
    %0 = arith.cmpi eq, %arg1, %c0_i32 : i32
    %1 = arith.extui %0 : i1 to i32
    %c0_i32_0 = arith.constant 0 : i32
    %2 = arith.cmpi ne, %1, %c0_i32_0 : i32
    scf.if %2 {
      %c0_8 = arith.constant 0 : index
      %c0_9 = arith.constant 0 : index
      %10 = vector.load %arg2[%c0_8, %c0_9] : memref<8x128xbf16, #tpu.memory_space<vmem>>, vector<8x128xbf16>
      %11 = arith.extf %10 : vector<8x128xbf16> to vector<8x128xf32>
      %cst_10 = arith.constant dense<0.000000e+00> : vector<8xf32>
      %12 = vector.multi_reduction <add>, %11, %cst_10 [1] : vector<8x128xf32> to vector<8xf32>
      %13 = vector.shape_cast %12 : vector<8xf32> to vector<8x1xf32>
      %cst_11 = arith.constant 3.125000e-02 : f32
      %14 = vector.broadcast %cst_11 : f32 to vector<8x1xf32>
      %15 = arith.mulf %13, %14 : vector<8x1xf32>
      %16 = vector.broadcast %15 : vector<8x1xf32> to vector<8x128xf32>
      %17 = arith.subf %11, %16 : vector<8x128xf32>
      %18 = tpu.iota {dimensions = array<i32: 1>} : vector<8x128xi32>
      %c32_i32 = arith.constant 32 : i32
      %19 = vector.broadcast %c32_i32 : i32 to vector<8x128xi32>
      %20 = arith.cmpi slt, %18, %19 : vector<8x128xi32>
      %cst_12 = arith.constant 0.000000e+00 : f32
      %21 = vector.broadcast %cst_12 : f32 to vector<8x128xf32>
      %22 = arith.select %20, %17, %21 : vector<8x128xi1>, vector<8x128xf32>
      %23 = arith.mulf %22, %22 : vector<8x128xf32>
      %cst_13 = arith.constant dense<0.000000e+00> : vector<8xf32>
      %24 = vector.multi_reduction <add>, %23, %cst_13 [1] : vector<8x128xf32> to vector<8xf32>
      %25 = vector.shape_cast %24 : vector<8xf32> to vector<8x1xf32>
      %cst_14 = arith.constant 3.125000e-02 : f32
      %26 = vector.broadcast %cst_14 : f32 to vector<8x1xf32>
      %27 = arith.mulf %25, %26 : vector<8x1xf32>
      %cst_15 = arith.constant 9.99999974E-6 : f32
      %28 = vector.broadcast %cst_15 : f32 to vector<8x1xf32>
      %29 = arith.addf %27, %28 : vector<8x1xf32>
      %30 = math.rsqrt %29 : vector<8x1xf32>
      %31 = vector.broadcast %30 : vector<8x1xf32> to vector<8x128xf32>
      %32 = arith.mulf %22, %31 : vector<8x128xf32>
      %c0_16 = arith.constant 0 : index
      %c0_17 = arith.constant 0 : index
      %33 = vector.load %arg3[%c0_16, %c0_17] : memref<1x128xf32, #tpu.memory_space<vmem>>, vector<1x128xf32>
      %34 = vector.broadcast %33 : vector<1x128xf32> to vector<8x128xf32>
      %35 = arith.mulf %32, %34 : vector<8x128xf32>
      %c0_18 = arith.constant 0 : index
      %c0_19 = arith.constant 0 : index
      %36 = vector.load %arg4[%c0_18, %c0_19] : memref<1x128xf32, #tpu.memory_space<vmem>>, vector<1x128xf32>
      %37 = vector.broadcast %36 : vector<1x128xf32> to vector<8x128xf32>
      %38 = arith.addf %35, %37 : vector<8x128xf32>
      %39 = arith.truncf %38 : vector<8x128xf32> to vector<8x128xbf16>
      %c0_20 = arith.constant 0 : index
      %c0_21 = arith.constant 0 : index
      %40 = vector.load %arg8[%c0_20, %c0_21] : memref<8x128xbf16, #tpu.memory_space<vmem>>, vector<8x128xbf16>
      tpu.vector_store %arg8[%c0_20, %c0_21], %39 {strides = array<i32>} : memref<8x128xbf16, #tpu.memory_space<vmem>>, vector<8x128xbf16>,
    } else {
    }
    %c0 = arith.constant 0 : index
    %c0_1 = arith.constant 0 : index
    %3 = vector.load %arg8[%c0, %c0_1] : memref<8x128xbf16, #tpu.memory_space<vmem>>, vector<8x128xbf16>
    %c0_2 = arith.constant 0 : index
    %c0_3 = arith.constant 0 : index
    %4 = vector.load %arg5[%c0_2, %c0_3] : memref<128x128xbf16, #tpu.memory_space<vmem>>, vector<128x128xbf16>
    %cst = arith.constant dense<0.000000e+00> : vector<8x128xf32>
    %5 = tpu.matmul %3, %4, %cst {dimension_numbers = #tpu.dot_dimension_numbers<[1], [0], [0], [1], [0, 0, 1, 1], [], []>} : vector<8x128xbf16>, vector<128x128xbf16>, vector<8x128xf32> -> vector<8x128xf32>
    %c0_4 = arith.constant 0 : index
    %c0_5 = arith.constant 0 : index
    %6 = vector.load %arg6[%c0_4, %c0_5] : memref<1x128xf32, #tpu.memory_space<vmem>>, vector<1x128xf32>
    %7 = vector.broadcast %6 : vector<1x128xf32> to vector<8x128xf32>
    %8 = arith.addf %5, %7 : vector<8x128xf32>
    %c0_6 = arith.constant 0 : index
    %c0_7 = arith.constant 0 : index
    %9 = vector.load %arg7[%c0_6, %c0_7] : memref<8x128xf32, #tpu.memory_space<vmem>>, vector<8x128xf32>
    tpu.vector_store %arg7[%c0_6, %c0_7], %8 {strides = array<i32>} : memref<8x128xf32, #tpu.memory_space<vmem>>, vector<8x128xf32>,
    return
  }
  func.func @transform_0(%arg0: i32, %arg1: i32) -> (i32, i32) {
    %c0_i32 = arith.constant 0 : i32
    %c0_i32_0 = arith.constant 0 : i32
    return %arg0, %c0_i32 : i32, i32
  }
  func.func @transform_1(%arg0: i32, %arg1: i32) -> (i32, i32) {
    %c0_i32 = arith.constant 0 : i32
    %c0_i32_0 = arith.constant 0 : i32
    %c0_i32_1 = arith.constant 0 : i32
    return %c0_i32, %c0_i32_0 : i32, i32
  }
  func.func @transform_2(%arg0: i32, %arg1: i32) -> (i32, i32) {
    %c0_i32 = arith.constant 0 : i32
    %c0_i32_0 = arith.constant 0 : i32
    %c0_i32_1 = arith.constant 0 : i32
    return %c0_i32, %c0_i32_0 : i32, i32
  }
  func.func @transform_3(%arg0: i32, %arg1: i32) -> (i32, i32) {
    %c0_i32 = arith.constant 0 : i32
    %c0_i32_0 = arith.constant 0 : i32
    return %c0_i32, %arg1 : i32, i32
  }
  func.func @transform_4(%arg0: i32, %arg1: i32) -> (i32, i32) {
    %c0_i32 = arith.constant 0 : i32
    %c0_i32_0 = arith.constant 0 : i32
    return %c0_i32, %arg1 : i32, i32
  }
  func.func @transform_5(%arg0: i32, %arg1: i32) -> (i32, i32) {
    %c0_i32 = arith.constant 0 : i32
    return %arg0, %arg1 : i32, i32
  }
}

</mosaic_0001>

<bundles_post_ra>
// kernel: tpu_custom_call.1
= control target key start
LH: loop header
LB: loop body
LE: loop exit
PB: predicated region body
PF: predicated region fallthrough
CT: control target
= control target key end

     0   :  { %s1070_s0 = inlined_call_operand.hbm [shape: bf16[16,128], index: 0, kind: input, shape index: {}]   ;;  %s1071_s1 = inlined_call_operand.vmem [shape: f32[1,128], index: 1, kind: input, shape index: {}]   ;;  %s1072_s2 = inlined_call_operand.vmem [shape: f32[1,128], index: 2, kind: input, shape index: {}]   ;;  %s1073_s3 = inlined_call_operand.hbm [shape: bf16[128,128], index: 3, kind: input, shape index: {}]   ;;  %s1074_s4 = inlined_call_operand.vmem [shape: f32[1,128], index: 4, kind: input, shape index: {}]   ;;  %s1075_s5 = inlined_call_operand.hbm [shape: f32[16,128], index: 5, kind: output, shape index: {}]  }
   0x1   :  { %1078 = sst [smem:[#allocation13_spill]] %s1073_s3 }
   0x2   :  { %10 = vsyncpa [#allocation4], 0 }
   0x3   :  { %12 = vsyncpa [#allocation4 + $0x1], 0 }
   0x4   :  { %13 = vsyncpa [#allocation7], 0 }
   0x5   :  { %14 = vsyncpa [#allocation5], 0 }
   0x6   :  { %16 = vsyncpa [#allocation5 + $0x1], 0  ;;  %s881_s18 = smov 0   ;;  %s883_s19 = smov 0  }
   0x7   :  { %s885_s20 = smov 0   ;;  %s887_s21 = smov 0  }
   0x8   :  { %s889_s22 = smov 0   ;;  %s891_s23 = smov 0  }
   0x9 LB: > { %s561_s24 = sadd.s32 4294967295, %s842_s23   ;;  %s562_s25 = sadd.s32 4294967294, %s842_s23   ;;  %s842_s23 = sphi %s891_s23, %s22_s23   ;;  %s838_s22 = sphi %s889_s22, %s1098_s22   ;;  %s834_s21 = sphi %s887_s21, %s1097_s21   ;;  %s830_s20 = sphi %s885_s20, %s1096_s20   ;;  %s826_s19 = sphi %s883_s19, %s1095_s19   ;;  %s822_s18 = sphi %s881_s18, %s1094_s18  }
   0xa   : > { %p54_p0 = scmp.ne.s32.totalorder %s826_s19, %s822_s18  ;;  %p915_p1 = scmp.eq.s32.totalorder %s561_s24, 0 }
   0xb   : > { %p919_p2 = scmp.eq.s32.totalorder %s561_s24, 1  ;;  %p180_p3 = scmp.eq.s32.totalorder %s562_s25, 1 }
   0xc   : > { %p925_p4 = por %p915_p1, %p54_p0  ;;  %p563_p5 = scmp.ge.s32.totalorder %s842_s23, 1 }
   0xd   : > { %p930_p6 = por %p180_p3, %p54_p0  ;;  %p187_p7 = scmp.lt.s32.totalorder %s842_s23, 3 }
   0xe   : > { %s1081_s28 = scalar_select %p925_p4, 1, 0 }
   0xf   : > { %s1082_s29 = scalar_select %p930_p6, 1, 0 }
  0x10   : > { %p935_p8 = pnand %p563_p5, %p187_p7  ;;  %s844_s6 = smov [#allocation6]  }
  0x11   : > { %s207_s7 = sshll.u32 %s844_s6, 4  ;;  %s34_s9 = sadd.s32 1, %s838_s22  ;;  %s208_s7 = int_to_ptr.vmem [resolvable:$true] %s207_s7 }
  0x12   : > { %p625_p9 = pneg %p935_p8  ;;  %s715_s10 = scalar_lea.vmem %s208_s7, 1024 }
  0x13   : > { %p716_p13 = scmp.ne.s32.totalorder %s208_s7, %s715_s10  ;;  %p723_p5 = scmp.lt.s32.totalorder %s208_s7, %s208_s7 }
  0x14   : > { %p944_p11 = pnand %p625_p9, %p915_p1  ;;  %p724_p7 = scmp.lt.s32.totalorder %s715_s10, %s715_s10 }
  0x16   : > { %p706_p12 = pneg %p944_p11  ;;  %p725_p6 = por %p724_p7, %p723_p5 }
  0x18   : > { %p718_p0 = pnand %p716_p13, %p706_p12 }
  0x1a   : > { %p719_p3 = pneg %p718_p0 }
  0x1c   : > { %p726_p4 = pnand %p725_p6, %p719_p3 }
  0x1e   : > { %729 = shalt.err (!%p726_p4)
}
  0x1f   : > { %s845_s11 = smov 64   ;;  %s846_s12 = smov 4  }
  0x20   : > { %s1085_s3 = sld [smem:[#allocation13_spill]]  ;;  %p36_p6 = scmp.ge.s32.totalorder %s34_s9, 2 }
  0x21   : > { %s41_s15 = sadd.s32 1, %s830_s20  ;;  %p48_p4 = scmp.ne.s32.totalorder %s830_s20, %s826_s19 }
  0x22   : > { %p49_p9 = scmp.eq.s32.totalorder %s842_s23, 0  ;;  %s1100_s9 = smov (%p36_p6, %s34_s9), 0 }
  0x23   : > { %1086 = sst [smem:[#allocation12_spill]] %s1100_s9  ;;  %p968_p13 = por %p919_p2, %p48_p4 }
  0x24   : > { %p962_p12 = por %p49_p9, %p48_p4  ;;  %s38_s24 = ssub.s32 %s838_s22, %s1100_s9 }
  0x25   : > { %p638_p0 = scmp.lt.s32.totalorder %s842_s23, 2  ;;  %s227_s25 = sand.u32 1, %s830_s20  }
  0x26   : > { %628 = dma.hbm_to_vmem [thread:$0]  (!%p944_p11), %s1085_s3, 1024, %s208_s7, [#allocation7], %s845_s11, %s845_s11, %s846_s12  }
  0x27   : > { %p39_p11 = scmp.eq.s32.totalorder %s38_s24, 0  ;;  %s567_s6 = sshll.u32 %s227_s25, 2 }
  0x28   : > { %s568_s8 = sshll.u32 %s838_s22, 6  ;;  %s231_s13 = scalar_lea.vmem [#allocation3], %s567_s6 }
  0x29   : > { %s977_s7 = scalar_select %p39_p11, %s830_s20, %s41_s15  }
  0x2a   : > { %s236_s12 = scalar_lea.hbm %s1070_s0, %s568_s8  ;;  %s238_s14 = sshll.u32 %s231_s13, 4  ;;  %s239_s14 = int_to_ptr.vmem [resolvable:$true] %s238_s14 }
  0x2b   : > { %p985_p2 = pnand %p638_p0, %p962_p12  ;;  %s228_s3 = scalar_lea.sflag [#allocation4], %s227_s25 }
  0x2c   : > { %s743_s24 = scalar_lea.vmem %s239_s14, 64  ;;  %s847_s15 = smov [#allocation3]  }
  0x2d   : > { %p732_p3 = pneg %p985_p2  ;;  %p744_p5 = scmp.ne.s32.totalorder %s239_s14, %s743_s24 }
  0x2e   : > { %s748_s9 = sshll.u32 %s847_s15, 4  ;;  %s749_s9 = int_to_ptr.vmem [resolvable:$false] %s748_s9 }
  0x2f   : > { %p746_p7 = pnand %p744_p5, %p732_p3  ;;  %s750_s8 = scalar_lea.vmem %s749_s9, 128 }
  0x30   : > { %p751_p4 = scmp.lt.s32.totalorder %s239_s14, %s749_s9  ;;  %p752_p9 = scmp.lt.s32.totalorder %s750_s8, %s743_s24 }
  0x31   : > { %p747_p6 = pneg %p746_p7 }
  0x32   : > { %p753_p11 = por %p752_p9, %p751_p4 }
  0x34   : > { %p754_p10 = pnand %p753_p11, %p747_p6 }
  0x36   : > { %757 = shalt.err (!%p754_p10)
}
  0x37   : > { %632 = dma.hbm_to_vmem [thread:$0]  (!%p985_p2), %s236_s12, 64, %s239_s14, %s228_s3  }
  0x38   : > { %247 = sbr.rel (%p935_p8) target bundleno = 593 (0x251), region = 40  ;;  %s996_s16 = sand.u32 (!%p935_p8), 1, %s826_s19  }
  0x39   : > { %s570_s25 = sshll.u32 (!%p935_p8), %s996_s16, 2  ;;  %s250_s6 = scalar_lea.sflag (!%p935_p8), [#allocation4], %s996_s16 }
  0x3a   : > { %s253_s10 = scalar_lea.vmem (!%p935_p8), [#allocation3], %s570_s25  ;;  %p1090_p12 = scmp.ne.s32.totalorder (!%p935_p8), %s1081_s28, 0 }
  0x3d   : > { %809 = dma.done.wait (%p1090_p12), %s250_s6, 64  }
  0x3e   : > { %811 = vsyncadd (%p1090_p12), %s250_s6, 4294967232 }
  0x3f   : > { %813 = dma.done.wait (%p915_p1), [#allocation7], 1024  }
  0x40   : > { %815 = vsyncadd (%p915_p1), [#allocation7], 4294966272  ;;  %v295_v0 = vld [vmem:[%s253_s10] sm:$0xf]  ;;  %v301_v2 = vlaneseq  ;;  %v848_v10 = vmov 0.0   ;;  %v695_v11 = vld [vmem:[#allocation6 + $0x30] sm:$0xff]  }
  0x41   : > { %v296_v1 = vunpack.c.l.bf16 %v295_v0  ;;  %v694_v9 = vld [vmem:[#allocation6 + $0x38] sm:$0xff]   ;;  %597 = vmatprep.subr.bf16.mxu0 %v848_v10  ;;  %v696_v12 = vld [vmem:[#allocation6 + $0x28] sm:$0xff]   ;;  %v697_v13 = vld [vmem:[#allocation6 + $0x20] sm:$0xff]   ;;  %vm849_vm1 = vmmov 0   ;;  %s572_s9 = sshll.u32 %s996_s16, 3  ;;  %s585_s13 = sshll.u32 %s834_s21, 7 }
  0x42   : > { %v302_v3 = vand.u32 127, %v301_v2  ;;  %598 = vmatpush3.bf16.msra.mxu0 %v694_v9  ;;  %v698_v14 = vld [vmem:[#allocation6 + $0x18] sm:$0xff]   ;;  %v699_v15 = vld [vmem:[#allocation6 + $0x10] sm:$0xff]   ;;  %v700_v16 = vld [vmem:[#allocation6 + $0x8] sm:$0xff]   ;;  %613 = vmatprep.mubr.msk.bf16.mxu0 %vm849_vm1, %v848_v10  ;;  %s286_s14 = scalar_lea.vmem [#allocation8], %s572_s9  ;;  %s1022_s8 = scalar_lea.hbm %s1075_s5, %s585_s13 }
  0x43   : > { %297 = vadd.xlane.f32.xlu0 %v296_v1  ;;  %599 = vmatprep.subr.bf16.mxu0 %v848_v10  ;;  %v701_v17 = vld [vmem:[#allocation6] sm:$0xff]   ;;  %v573_v22 = vld [vmem:[%s1071_s1] ss:$0 sm:$0xff]  ;;  %s458_s27 = sshll.u32 %s286_s14, 4  ;;  %s444_s25 = scalar_lea.sflag [#allocation5], %s996_s16  ;;  %s1024_s27 = int_to_ptr.vmem [resolvable:$true] %s458_s27 }
  0x44   : > { %vm303_vm0 = vcmp.lt.s32.totalorder %v302_v3, 32  ;;  %v574_v24 = vld [vmem:[%s1072_s2] ss:$0 sm:$0xff]  ;;  %s758_s6 = scalar_lea.vmem %s1024_s27, 128  ;;  %s850_s21 = smov [#allocation8]  }
  0x45   : > { %v575_v29 = vld [vmem:[%s1074_s4] ss:$0 sm:$0xff]  ;;  %p759_p1 = scmp.ne.s32.totalorder %s1024_s27, %s758_s6  ;;  %s762_s10 = sshll.u32 %s850_s21, 4  ;;  %s763_s10 = int_to_ptr.vmem [resolvable:$false] %s762_s10 }
  0x46   : > { %600 = vmatpush3.bf16.msra.mxu0 %v695_v11  ;;  %s764_s3 = scalar_lea.vmem %s763_s10, 256  ;;  %p765_p0 = scmp.lt.s32.totalorder %s1024_s27, %s763_s10 }
  0x47   : > { %601 = vmatprep.subr.bf16.mxu0 %v848_v10  ;;  %p760_p8 = pnand %p759_p1, %p968_p13  ;;  %p766_p2 = scmp.lt.s32.totalorder %s764_s3, %s758_s6 }
  0x49   : > { %p761_p10 = pneg %p760_p8  ;;  %p767_p3 = por %p766_p2, %p765_p0 }
  0x4a   : > { %602 = vmatpush3.bf16.msra.mxu0 %v696_v12 }
  0x4b   : > { %603 = vmatprep.subr.bf16.mxu0 %v848_v10  ;;  %p768_p5 = pnand %p767_p3, %p761_p10 }
  0x4e   : > { %604 = vmatpush3.bf16.msra.mxu0 %v697_v13 }
  0x4f   : > { %605 = vmatprep.subr.bf16.mxu0 %v848_v10 }
  0x52   : > { %606 = vmatpush3.bf16.msra.mxu0 %v698_v14 }
  0x53   : > { %607 = vmatprep.subr.bf16.mxu0 %v848_v10 }
  0x56   : > { %608 = vmatpush3.bf16.msra.mxu0 %v699_v15 }
  0x57   : > { %609 = vmatprep.subr.bf16.mxu0 %v848_v10 }
  0x5a   : > { %610 = vmatpush3.bf16.msra.mxu0 %v700_v16 }
  0x5b   : > { %611 = vmatprep.subr.bf16.mxu0 %v848_v10 }
  0x5e   : > { %612 = vmatpush3.bf16.msra.mxu0 %v701_v17 }
  0xcc   : > { %v298_v4 = vpop.xlane.xlu0 %297 }
  0xcd   : > { %v299_v5 = vmul.f32 0.03125, %v298_v4 }
  0xcf   : > { %v300_v6 = vsub.f32 %v296_v1, %v299_v5 }
  0xd1   : > { %v304_v7 = vsel %vm303_vm0, %v300_v6, 0.0 }
  0xd2   : > { %v305_v8 = vmul.f32 %v304_v7, %v304_v7 }
  0xd4   : > { %306 = vadd.xlane.f32.xlu0 %v305_v8 }
 0x15d   : > { %v307_v18 = vpop.xlane.xlu0 %306 }
 0x15e   : > { %v308_v19 = vmul.f32 0.03125, %v307_v18 }
 0x160   : > { %v309_v20 = vadd.f32 1e-05, %v308_v19 }
 0x162   : > { %702 = vrsqrt.f32 %v309_v20 }
 0x16f   : > { %v703_v21 = vpop.eup %702 }
 0x170   : > { %v311_v23 = vmul.f32 %v703_v21, %v304_v7 }
 0x172   : > { %v319_v25 = vmul.f32 %v573_v22, %v311_v23 }
 0x174   : > { %v327_v26 = vadd.f32 %v574_v24, %v319_v25 }
 0x176   : > { %v328_v27 = vpack.c.bf16 %v327_v26, %v327_v26 }
 0x178   : > { %329 = vst [vmem:[#allocation2] sm:$0xf] %v328_v27 }
 0x17f   : > { %v330_v28 = vld [vmem:[#allocation2] sm:$0xf] }
 0x180   : > { %614 = vmatmul.mubr.bf16.vlgmr.msra.gmra.mxu0 %v330_v28 }
 0x240   : > { %v436_v30 = vpop.f32.mrf.mxu0 }
 0x241   : > { %v437_v31 = vadd.f32 %v575_v29, %v436_v30 }
 0x242   : > { %v615_v32 = vpop.f32.mrf.mxu0 }
 0x243   : > { %442 = vst [vmem:[%s286_s14] sm:$0xff] %v437_v31 }
 0x244   : > { %v439_v33 = vpop.f32.mrf.mxu0 }
 0x245   : > { %771 = shalt.err (!%p768_p5)
}
 0x246   : > { %s772_s26 = scalar_lea.hbm %s1022_s8, 128  ;;  %s776_s30 = scalar_lea.hbm %s1075_s5, 256 }
 0x247   : > { %p773_p7 = scmp.ne.s32.totalorder %s1022_s8, %s772_s26  ;;  %p777_p9 = scmp.lt.s32.totalorder %s1022_s8, %s1075_s5 }
 0x248   : > { %p778_p11 = scmp.lt.s32.totalorder %s776_s30, %s772_s26 }
 0x249   : > { %p774_p6 = pnand %p773_p7, %p968_p13 }
 0x24a   : > { %p779_p12 = por %p778_p11, %p777_p9 }
 0x24b   : > { %p775_p4 = pneg %p774_p6 }
 0x24d   : > { %p780_p1 = pnand %p779_p12, %p775_p4 }
 0x24f   : > { %783 = shalt.err (!%p780_p1)
}
 0x250   : > { %623 = dma.vmem_to_hbm [thread:$0]  (%p968_p13), %s1024_s27, 128, %s1022_s8, %s444_s25   ;;  %v616_v34 = vpop.f32.mrf.mxu0 }
 0x251 PF: > { %s470_s12 = sand.u32 1, %s822_s18   ;;  %p1091_p8 = scmp.ne.s32.totalorder %s1082_s29, 0 }
 0x252   : > { %p1092_p10 = scmp.ge.s32.totalorder %s842_s23, 2  ;;  %s471_s13 = scalar_lea.sflag [#allocation5], %s470_s12 }
 0x254   : > { %p634_p0 = pnand %p1092_p10, %p1091_p8 }
 0x256   : > { %p635_p2 = pneg %p634_p0 }
 0x258   : > { %817 = dma.done.wait (%p635_p2), %s471_s13, 128  }
 0x259   : > { %819 = vsyncadd (%p635_p2), %s471_s13, 4294967168  ;;  %s22_s23 = sadd.s32 1, %s842_s23   ;;  %s1093_s17 = sld [smem:[#allocation12_spill]] }
 0x25a   : > { %p19_p3 = scmp.ge.s32.totalorder %s22_s23, 4   ;;  %s1094_s18 = smov %s826_s19 }
 0x25b   : > { %s1095_s19 = smov %s830_s20  ;;  %s1096_s20 = smov %s977_s7 }
 0x25c   : > { %s1097_s21 = smov %s838_s22  ;;  %21 = sbr.rel (!%p19_p3) target bundleno = 9 (0x9), region = 97 }
 0x25f   : > { %s1098_s22 = smov %s1093_s17 }
 0x261   :  { %476 = vsyncpa [#allocation4], 1 }
 0x262   :  { %478 = vsyncpa [#allocation4 + $0x1], 1 }
 0x263   :  { %479 = vsyncpa [#allocation7], 1 }
 0x264   :  { %480 = vsyncpa [#allocation5], 1 }
 0x265   :  { %482 = vsyncpa [#allocation5 + $0x1], 1 }

// kernel: tpu_custom_call.1
= control target key start
LH: loop header
LB: loop body
LE: loop exit
PB: predicated region body
PF: predicated region fallthrough
CT: control target
= control target key end

     0   :  { %s1070_s0 = inlined_call_operand.hbm [shape: bf16[16,128], index: 0, kind: input, shape index: {}]   ;;  %s1071_s1 = inlined_call_operand.vmem [shape: f32[1,128], index: 1, kind: input, shape index: {}]   ;;  %s1072_s2 = inlined_call_operand.vmem [shape: f32[1,128], index: 2, kind: input, shape index: {}]   ;;  %s1073_s3 = inlined_call_operand.hbm [shape: bf16[128,128], index: 3, kind: input, shape index: {}]   ;;  %s1074_s4 = inlined_call_operand.vmem [shape: f32[1,128], index: 4, kind: input, shape index: {}]   ;;  %s1075_s5 = inlined_call_operand.hbm [shape: f32[16,128], index: 5, kind: output, shape index: {}]  }
   0x1   :  { %1078 = sst [smem:[#allocation13_spill]] %s1073_s3 }
   0x2   :  { %10 = vsyncpa [#allocation4], 0 }
   0x3   :  { %12 = vsyncpa [#allocation4 + $0x1], 0 }
   0x4   :  { %13 = vsyncpa [#allocation7], 0 }
   0x5   :  { %14 = vsyncpa [#allocation5], 0 }
   0x6   :  { %16 = vsyncpa [#allocation5 + $0x1], 0  ;;  %s881_s18 = smov 0   ;;  %s883_s19 = smov 0  }
   0x7   :  { %s885_s20 = smov 0   ;;  %s887_s21 = smov 0  }
   0x8   :  { %s889_s22 = smov 0   ;;  %s891_s23 = smov 0  }
   0x9 LB: > { %s561_s24 = sadd.s32 4294967295, %s842_s23   ;;  %s562_s25 = sadd.s32 4294967294, %s842_s23   ;;  %s842_s23 = sphi %s891_s23, %s22_s23   ;;  %s838_s22 = sphi %s889_s22, %s1098_s22   ;;  %s834_s21 = sphi %s887_s21, %s1097_s21   ;;  %s830_s20 = sphi %s885_s20, %s1096_s20   ;;  %s826_s19 = sphi %s883_s19, %s1095_s19   ;;  %s822_s18 = sphi %s881_s18, %s1094_s18  }
   0xa   : > { %p54_p0 = scmp.ne.s32.totalorder %s826_s19, %s822_s18  ;;  %p915_p1 = scmp.eq.s32.totalorder %s561_s24, 0 }
   0xb   : > { %p919_p2 = scmp.eq.s32.totalorder %s561_s24, 1  ;;  %p180_p3 = scmp.eq.s32.totalorder %s562_s25, 1 }
   0xc   : > { %p925_p4 = por %p915_p1, %p54_p0  ;;  %p563_p5 = scmp.ge.s32.totalorder %s842_s23, 1 }
   0xd   : > { %p930_p6 = por %p180_p3, %p54_p0  ;;  %p187_p7 = scmp.lt.s32.totalorder %s842_s23, 3 }
   0xe   : > { %s1081_s28 = scalar_select %p925_p4, 1, 0 }
   0xf   : > { %s1082_s29 = scalar_select %p930_p6, 1, 0 }
  0x10   : > { %p935_p8 = pnand %p563_p5, %p187_p7  ;;  %s844_s6 = smov [#allocation6]  }
  0x11   : > { %s207_s7 = sshll.u32 %s844_s6, 4  ;;  %s34_s9 = sadd.s32 1, %s838_s22  ;;  %s208_s7 = int_to_ptr.vmem [resolvable:$true] %s207_s7 }
  0x12   : > { %p625_p9 = pneg %p935_p8  ;;  %s715_s10 = scalar_lea.vmem %s208_s7, 1024 }
  0x13   : > { %p716_p13 = scmp.ne.s32.totalorder %s208_s7, %s715_s10  ;;  %p723_p5 = scmp.lt.s32.totalorder %s208_s7, %s208_s7 }
  0x14   : > { %p944_p11 = pnand %p625_p9, %p915_p1  ;;  %p724_p7 = scmp.lt.s32.totalorder %s715_s10, %s715_s10 }
  0x16   : > { %p706_p12 = pneg %p944_p11  ;;  %p725_p6 = por %p724_p7, %p723_p5 }
  0x18   : > { %p718_p0 = pnand %p716_p13, %p706_p12 }
  0x1a   : > { %p719_p3 = pneg %p718_p0 }
  0x1c   : > { %p726_p4 = pnand %p725_p6, %p719_p3 }
  0x1e   : > { %729 = shalt.err (!%p726_p4)
}
  0x1f   : > { %s845_s11 = smov 64   ;;  %s846_s12 = smov 4  }
  0x20   : > { %s1085_s3 = sld [smem:[#allocation13_spill]]  ;;  %p36_p6 = scmp.ge.s32.totalorder %s34_s9, 2 }
  0x21   : > { %s41_s15 = sadd.s32 1, %s830_s20  ;;  %p48_p4 = scmp.ne.s32.totalorder %s830_s20, %s826_s19 }
  0x22   : > { %p49_p9 = scmp.eq.s32.totalorder %s842_s23, 0  ;;  %s1100_s9 = smov (%p36_p6, %s34_s9), 0 }
  0x23   : > { %1086 = sst [smem:[#allocation12_spill]] %s1100_s9  ;;  %p968_p13 = por %p919_p2, %p48_p4 }
  0x24   : > { %p962_p12 = por %p49_p9, %p48_p4  ;;  %s38_s24 = ssub.s32 %s838_s22, %s1100_s9 }
  0x25   : > { %p638_p0 = scmp.lt.s32.totalorder %s842_s23, 2  ;;  %s227_s25 = sand.u32 1, %s830_s20  }
  0x26   : > { %628 = dma.hbm_to_vmem [thread:$0]  (!%p944_p11), %s1085_s3, 1024, %s208_s7, [#allocation7], %s845_s11, %s845_s11, %s846_s12  }
  0x27   : > { %p39_p11 = scmp.eq.s32.totalorder %s38_s24, 0  ;;  %s567_s6 = sshll.u32 %s227_s25, 2 }
  0x28   : > { %s568_s8 = sshll.u32 %s838_s22, 6  ;;  %s231_s13 = scalar_lea.vmem [#allocation3], %s567_s6 }
  0x29   : > { %s977_s7 = scalar_select %p39_p11, %s830_s20, %s41_s15  }
  0x2a   : > { %s236_s12 = scalar_lea.hbm %s1070_s0, %s568_s8  ;;  %s238_s14 = sshll.u32 %s231_s13, 4  ;;  %s239_s14 = int_to_ptr.vmem [resolvable:$true] %s238_s14 }
  0x2b   : > { %p985_p2 = pnand %p638_p0, %p962_p12  ;;  %s228_s3 = scalar_lea.sflag [#allocation4], %s227_s25 }
  0x2c   : > { %s743_s24 = scalar_lea.vmem %s239_s14, 64  ;;  %s847_s15 = smov [#allocation3]  }
  0x2d   : > { %p732_p3 = pneg %p985_p2  ;;  %p744_p5 = scmp.ne.s32.totalorder %s239_s14, %s743_s24 }
  0x2e   : > { %s748_s9 = sshll.u32 %s847_s15, 4  ;;  %s749_s9 = int_to_ptr.vmem [resolvable:$false] %s748_s9 }
  0x2f   : > { %p746_p7 = pnand %p744_p5, %p732_p3  ;;  %s750_s8 = scalar_lea.vmem %s749_s9, 128 }
  0x30   : > { %p751_p4 = scmp.lt.s32.totalorder %s239_s14, %s749_s9  ;;  %p752_p9 = scmp.lt.s32.totalorder %s750_s8, %s743_s24 }
  0x31   : > { %p747_p6 = pneg %p746_p7 }
  0x32   : > { %p753_p11 = por %p752_p9, %p751_p4 }
  0x34   : > { %p754_p10 = pnand %p753_p11, %p747_p6 }
  0x36   : > { %757 = shalt.err (!%p754_p10)
}
  0x37   : > { %632 = dma.hbm_to_vmem [thread:$0]  (!%p985_p2), %s236_s12, 64, %s239_s14, %s228_s3  }
  0x38   : > { %247 = sbr.rel (%p935_p8) target bundleno = 593 (0x251), region = 40  ;;  %s996_s16 = sand.u32 (!%p935_p8), 1, %s826_s19  }
  0x39   : > { %s570_s25 = sshll.u32 (!%p935_p8), %s996_s16, 2  ;;  %s250_s6 = scalar_lea.sflag (!%p935_p8), [#allocation4], %s996_s16 }
  0x3a   : > { %s253_s10 = scalar_lea.vmem (!%p935_p8), [#allocation3], %s570_s25  ;;  %p1090_p12 = scmp.ne.s32.totalorder (!%p935_p8), %s1081_s28, 0 }
  0x3d   : > { %809 = dma.done.wait (%p1090_p12), %s250_s6, 64  }
  0x3e   : > { %811 = vsyncadd (%p1090_p12), %s250_s6, 4294967232 }
  0x3f   : > { %813 = dma.done.wait (%p915_p1), [#allocation7], 1024  }
  0x40   : > { %815 = vsyncadd (%p915_p1), [#allocation7], 4294966272  ;;  %v295_v0 = vld [vmem:[%s253_s10] sm:$0xf]  ;;  %v301_v2 = vlaneseq  ;;  %v848_v10 = vmov 0.0   ;;  %v695_v11 = vld [vmem:[#allocation6 + $0x30] sm:$0xff]  }
  0x41   : > { %v296_v1 = vunpack.c.l.bf16 %v295_v0  ;;  %v694_v9 = vld [vmem:[#allocation6 + $0x38] sm:$0xff]   ;;  %597 = vmatprep.subr.bf16.mxu0 %v848_v10  ;;  %v696_v12 = vld [vmem:[#allocation6 + $0x28] sm:$0xff]   ;;  %v697_v13 = vld [vmem:[#allocation6 + $0x20] sm:$0xff]   ;;  %vm849_vm1 = vmmov 0   ;;  %s572_s9 = sshll.u32 %s996_s16, 3  ;;  %s585_s13 = sshll.u32 %s834_s21, 7 }
  0x42   : > { %v302_v3 = vand.u32 127, %v301_v2  ;;  %598 = vmatpush3.bf16.msra.mxu0 %v694_v9  ;;  %v698_v14 = vld [vmem:[#allocation6 + $0x18] sm:$0xff]   ;;  %v699_v15 = vld [vmem:[#allocation6 + $0x10] sm:$0xff]   ;;  %v700_v16 = vld [vmem:[#allocation6 + $0x8] sm:$0xff]   ;;  %613 = vmatprep.mubr.msk.bf16.mxu0 %vm849_vm1, %v848_v10  ;;  %s286_s14 = scalar_lea.vmem [#allocation8], %s572_s9  ;;  %s1022_s8 = scalar_lea.hbm %s1075_s5, %s585_s13 }
  0x43   : > { %297 = vadd.xlane.f32.xlu0 %v296_v1  ;;  %599 = vmatprep.subr.bf16.mxu0 %v848_v10  ;;  %v701_v17 = vld [vmem:[#allocation6] sm:$0xff]   ;;  %v573_v22 = vld [vmem:[%s1071_s1] ss:$0 sm:$0xff]  ;;  %s458_s27 = sshll.u32 %s286_s14, 4  ;;  %s444_s25 = scalar_lea.sflag [#allocation5], %s996_s16  ;;  %s1024_s27 = int_to_ptr.vmem [resolvable:$true] %s458_s27 }
  0x44   : > { %vm303_vm0 = vcmp.lt.s32.totalorder %v302_v3, 32  ;;  %v574_v24 = vld [vmem:[%s1072_s2] ss:$0 sm:$0xff]  ;;  %s758_s6 = scalar_lea.vmem %s1024_s27, 128  ;;  %s850_s21 = smov [#allocation8]  }
  0x45   : > { %v575_v29 = vld [vmem:[%s1074_s4] ss:$0 sm:$0xff]  ;;  %p759_p1 = scmp.ne.s32.totalorder %s1024_s27, %s758_s6  ;;  %s762_s10 = sshll.u32 %s850_s21, 4  ;;  %s763_s10 = int_to_ptr.vmem [resolvable:$false] %s762_s10 }
  0x46   : > { %600 = vmatpush3.bf16.msra.mxu0 %v695_v11  ;;  %s764_s3 = scalar_lea.vmem %s763_s10, 256  ;;  %p765_p0 = scmp.lt.s32.totalorder %s1024_s27, %s763_s10 }
  0x47   : > { %601 = vmatprep.subr.bf16.mxu0 %v848_v10  ;;  %p760_p8 = pnand %p759_p1, %p968_p13  ;;  %p766_p2 = scmp.lt.s32.totalorder %s764_s3, %s758_s6 }
  0x49   : > { %p761_p10 = pneg %p760_p8  ;;  %p767_p3 = por %p766_p2, %p765_p0 }
  0x4a   : > { %602 = vmatpush3.bf16.msra.mxu0 %v696_v12 }
  0x4b   : > { %603 = vmatprep.subr.bf16.mxu0 %v848_v10  ;;  %p768_p5 = pnand %p767_p3, %p761_p10 }
  0x4e   : > { %604 = vmatpush3.bf16.msra.mxu0 %v697_v13 }
  0x4f   : > { %605 = vmatprep.subr.bf16.mxu0 %v848_v10 }
  0x52   : > { %606 = vmatpush3.bf16.msra.mxu0 %v698_v14 }
  0x53   : > { %607 = vmatprep.subr.bf16.mxu0 %v848_v10 }
  0x56   : > { %608 = vmatpush3.bf16.msra.mxu0 %v699_v15 }
  0x57   : > { %609 = vmatprep.subr.bf16.mxu0 %v848_v10 }
  0x5a   : > { %610 = vmatpush3.bf16.msra.mxu0 %v700_v16 }
  0x5b   : > { %611 = vmatprep.subr.bf16.mxu0 %v848_v10 }
  0x5e   : > { %612 = vmatpush3.bf16.msra.mxu0 %v701_v17 }
  0xcc   : > { %v298_v4 = vpop.xlane.xlu0 %297 }
  0xcd   : > { %v299_v5 = vmul.f32 0.03125, %v298_v4 }
  0xcf   : > { %v300_v6 = vsub.f32 %v296_v1, %v299_v5 }
  0xd1   : > { %v304_v7 = vsel %vm303_vm0, %v300_v6, 0.0 }
  0xd2   : > { %v305_v8 = vmul.f32 %v304_v7, %v304_v7 }
  0xd4   : > { %306 = vadd.xlane.f32.xlu0 %v305_v8 }
 0x15d   : > { %v307_v18 = vpop.xlane.xlu0 %306 }
 0x15e   : > { %v308_v19 = vmul.f32 0.03125, %v307_v18 }
 0x160   : > { %v309_v20 = vadd.f32 1e-05, %v308_v19 }
 0x162   : > { %702 = vrsqrt.f32 %v309_v20 }
 0x16f   : > { %v703_v21 = vpop.eup %702 }
 0x170   : > { %v311_v23 = vmul.f32 %v703_v21, %v304_v7 }
 0x172   : > { %v319_v25 = vmul.f32 %v573_v22, %v311_v23 }
 0x174   : > { %v327_v26 = vadd.f32 %v574_v24, %v319_v25 }
 0x176   : > { %v328_v27 = vpack.c.bf16 %v327_v26, %v327_v26 }
 0x178   : > { %329 = vst [vmem:[#allocation2] sm:$0xf] %v328_v27 }
 0x17f   : > { %v330_v28 = vld [vmem:[#allocation2] sm:$0xf] }
 0x180   : > { %614 = vmatmul.mubr.bf16.vlgmr.msra.gmra.mxu0 %v330_v28 }
 0x240   : > { %v436_v30 = vpop.f32.mrf.mxu0 }
 0x241   : > { %v437_v31 = vadd.f32 %v575_v29, %v436_v30 }
 0x242   : > { %v615_v32 = vpop.f32.mrf.mxu0 }
 0x243   : > { %442 = vst [vmem:[%s286_s14] sm:$0xff] %v437_v31 }
 0x244   : > { %v439_v33 = vpop.f32.mrf.mxu0 }
 0x245   : > { %771 = shalt.err (!%p768_p5)
}
 0x246   : > { %s772_s26 = scalar_lea.hbm %s1022_s8, 128  ;;  %s776_s30 = scalar_lea.hbm %s1075_s5, 256 }
 0x247   : > { %p773_p7 = scmp.ne.s32.totalorder %s1022_s8, %s772_s26  ;;  %p777_p9 = scmp.lt.s32.totalorder %s1022_s8, %s1075_s5 }
 0x248   : > { %p778_p11 = scmp.lt.s32.totalorder %s776_s30, %s772_s26 }
 0x249   : > { %p774_p6 = pnand %p773_p7, %p968_p13 }
 0x24a   : > { %p779_p12 = por %p778_p11, %p777_p9 }
 0x24b   : > { %p775_p4 = pneg %p774_p6 }
 0x24d   : > { %p780_p1 = pnand %p779_p12, %p775_p4 }
 0x24f   : > { %783 = shalt.err (!%p780_p1)
}
 0x250   : > { %623 = dma.vmem_to_hbm [thread:$0]  (%p968_p13), %s1024_s27, 128, %s1022_s8, %s444_s25   ;;  %v616_v34 = vpop.f32.mrf.mxu0 }
 0x251 PF: > { %s470_s12 = sand.u32 1, %s822_s18   ;;  %p1091_p8 = scmp.ne.s32.totalorder %s1082_s29, 0 }
 0x252   : > { %p1092_p10 = scmp.ge.s32.totalorder %s842_s23, 2  ;;  %s471_s13 = scalar_lea.sflag [#allocation5], %s470_s12 }
 0x254   : > { %p634_p0 = pnand %p1092_p10, %p1091_p8 }
 0x256   : > { %p635_p2 = pneg %p634_p0 }
 0x258   : > { %817 = dma.done.wait (%p635_p2), %s471_s13, 128  }
 0x259   : > { %819 = vsyncadd (%p635_p2), %s471_s13, 4294967168  ;;  %s22_s23 = sadd.s32 1, %s842_s23   ;;  %s1093_s17 = sld [smem:[#allocation12_spill]] }
 0x25a   : > { %p19_p3 = scmp.ge.s32.totalorder %s22_s23, 4   ;;  %s1094_s18 = smov %s826_s19 }
 0x25b   : > { %s1095_s19 = smov %s830_s20  ;;  %s1096_s20 = smov %s977_s7 }
 0x25c   : > { %s1097_s21 = smov %s838_s22  ;;  %21 = sbr.rel (!%p19_p3) target bundleno = 9 (0x9), region = 97 }
 0x25f   : > { %s1098_s22 = smov %s1093_s17 }
 0x261   :  { %476 = vsyncpa [#allocation4], 1 }
 0x262   :  { %478 = vsyncpa [#allocation4 + $0x1], 1 }
 0x263   :  { %479 = vsyncpa [#allocation7], 1 }
 0x264   :  { %480 = vsyncpa [#allocation5], 1 }
 0x265   :  { %482 = vsyncpa [#allocation5 + $0x1], 1 }

</bundles_post_ra>
